<compile_context>
chip_gen: v5e
topology: v5e:2x2
jax: 0.10.0
libtpu: 0.0.40
codegen_flags: <defaults>
</compile_context>

<pallas_src>
import jax
import jax.numpy as jnp
from jax.experimental import pallas as pl
from jax.experimental.pallas import tpu as pltpu


def sample_model_kernel(x_ref, q_ref, y_ref):
    # y = a*x + b + q with a == 3 and b == 2 folded into immediates.
    # Pure int32 elementwise VPU ops (one mul + two adds).
    y_ref[...] = 3 * x_ref[...] + (q_ref[...] + 2)


# ---------------------------------------------------------------------------
# Single-sample entry point: exact module signature, shape (2, 2) int32.
# ---------------------------------------------------------------------------
def _sample_model_forward_single(x: jax.Array, q: jax.Array) -> jax.Array:
    # Tiny (2,2) tensors: one grid point, full-array blocks resident in VMEM.
    full_spec = pl.BlockSpec((2, 2), lambda: (0, 0))
    return pl.pallas_call(
        sample_model_kernel,
        out_shape=jax.ShapeDtypeStruct((2, 2), jnp.int32),
        in_specs=[full_spec, full_spec],
        out_specs=full_spec,
        # y reuses q's HBM buffer; caller must not read q after the call.
        input_output_aliases={1: 0},
    )(x, q)


# q (arg 1) is donated so the input/output aliasing avoids a fresh HBM buffer.
sample_model_forward = jax.jit(_sample_model_forward_single, donate_argnums=(1,))


# ---------------------------------------------------------------------------
# Batched entry point: N independent (2,2) samples in one lane-dense call.
# This is the recommended path when the op is invoked repeatedly — it amortizes
# the pallas_call launch + per-DMA fixed overhead and turns the masked (2,2)
# partial store into unmasked 128-lane stores.
# ---------------------------------------------------------------------------
def sample_model_forward_batched(x: jax.Array, q: jax.Array) -> jax.Array:
    assert x.shape == q.shape and x.shape[1:] == (2, 2), (x.shape, q.shape)
    assert x.dtype == jnp.int32 and q.dtype == jnp.int32, (x.dtype, q.dtype)
    n = x.shape[0]
    n_elems = n * 4
    # Keep the demo simple: require a whole number of 128-lane rows, and a row
    # count divisible by the 8-sublane tile.  (Real code would pad the tail.)
    assert n_elems % (8 * 128) == 0, "batch must pack into whole (8,128) tiles"
    rows = n_elems // 128

    # Contiguous, per-array reshape is a free view for an elementwise op
    # (NOT a stack/concat of x with q, which would be extra HBM traffic).
    xf = x.reshape(rows, 128)
    qf = q.reshape(rows, 128)

    tile_rows = min(rows, 512)
    assert rows % tile_rows == 0
    grid = (rows // tile_rows,)
    spec = pl.BlockSpec((tile_rows, 128), lambda i: (i, 0))

    out = pl.pallas_call(
        sample_model_kernel,
        out_shape=jax.ShapeDtypeStruct((rows, 128), jnp.int32),
        grid=grid,
        in_specs=[spec, spec],
        out_specs=spec,
        input_output_aliases={1: 0},
        compiler_params=pltpu.CompilerParams(dimension_semantics=("parallel",)),
    )(xf, qf)
    return out.reshape(n, 2, 2)


if __name__ == "__main__":
    key = jax.random.PRNGKey(0)
    kx, kq, kbx, kbq = jax.random.split(key, 4)

    # Deterministic buffers exactly as in SampleModel.__init__ (used only for
    # the reference check — the kernel folds them in as immediates 3 and 2).
    a = 3 * jnp.ones((2, 2), dtype=jnp.int32)
    b = 2 * jnp.ones((2, 2), dtype=jnp.int32)

    # ---- single-sample path: the module's exact (2,2) int32 signature -------
    x = jax.random.randint(kx, (2, 2), minval=-10, maxval=10, dtype=jnp.int32)
    q = jax.random.randint(kq, (2, 2), minval=-10, maxval=10, dtype=jnp.int32)

    # Compute the reference BEFORE the call: q is donated to the kernel.
    y_ref = a * x + b + q
    y = sample_model_forward(x, q)
    y = jax.block_until_ready(y)
    assert y.dtype == jnp.int32 and y.shape == (2, 2)
    assert bool(jnp.all(y == y_ref))

    # ---- batched path: 256 samples in one lane-dense pallas_call ------------
    N = 256
    xb = jax.random.randint(kbx, (N, 2, 2), minval=-1000, maxval=1000, dtype=jnp.int32)
    qb = jax.random.randint(kbq, (N, 2, 2), minval=-1000, maxval=1000, dtype=jnp.int32)
    yb_ref = a[None] * xb + b[None] + qb
    yb = sample_model_forward_batched(xb, qb)
    yb = jax.block_until_ready(yb)
    assert yb.dtype == jnp.int32 and yb.shape == (N, 2, 2)
    assert bool(jnp.all(yb == yb_ref))

    print("KERNEL_OK")
</pallas_src>

<mosaic_0001>
module attributes {stable_mosaic.version = 11 : i64} {
  func.func @sample_model_kernel(%arg0: memref<2x2xi32, #tpu.memory_space<vmem>>, %arg1: memref<2x2xi32, #tpu.memory_space<vmem>>, %arg2: memref<2x2xi32, #tpu.memory_space<vmem>>) attributes {dimension_semantics = [], scalar_prefetch = 0 : i64, scratch_operands = 0 : i64, tpu.core_type = #tpu.core_type<tc>} {
    %c0 = arith.constant 0 : index
    %c0_0 = arith.constant 0 : index
    %0 = vector.load %arg0[%c0, %c0_0] : memref<2x2xi32, #tpu.memory_space<vmem>>, vector<2x2xi32>
    %c3_i32 = arith.constant 3 : i32
    %1 = vector.broadcast %c3_i32 : i32 to vector<2x2xi32>
    %2 = arith.muli %1, %0 : vector<2x2xi32>
    %c0_1 = arith.constant 0 : index
    %c0_2 = arith.constant 0 : index
    %3 = vector.load %arg1[%c0_1, %c0_2] : memref<2x2xi32, #tpu.memory_space<vmem>>, vector<2x2xi32>
    %c2_i32 = arith.constant 2 : i32
    %4 = vector.broadcast %c2_i32 : i32 to vector<2x2xi32>
    %5 = arith.addi %3, %4 : vector<2x2xi32>
    %6 = arith.addi %2, %5 : vector<2x2xi32>
    %c0_3 = arith.constant 0 : index
    %c0_4 = arith.constant 0 : index
    %7 = vector.load %arg2[%c0_3, %c0_4] : memref<2x2xi32, #tpu.memory_space<vmem>>, vector<2x2xi32>
    tpu.vector_store %arg2[%c0_3, %c0_4], %6 {strides = array<i32>} : memref<2x2xi32, #tpu.memory_space<vmem>>, vector<2x2xi32>,
    return
  }
}

</mosaic_0001>

<bundles_post_ra>
// kernel: _sample_model_forward_single.1
= control target key start
LH: loop header
LB: loop body
LE: loop exit
PB: predicated region body
PF: predicated region fallthrough
CT: control target
= control target key end

     0   :  { %7 = vsyncpa [#allocation3], 0  ;;  %s173_s0 = inlined_call_operand.hbm [shape: s32[2,2], index: 0, kind: input, shape index: {}]   ;;  %s174_s1 = inlined_call_operand.hbm [shape: s32[2,2], index: 1, kind: input, shape index: {}, may-alias: {1,2}]   ;;  %s175_s2 = inlined_call_operand.hbm [shape: s32[2,2], index: 2, kind: output, shape index: {}, may-alias: {1,2}]  }
   0x1   :  { %8 = vsyncpa [#allocation6], 0 }
   0x2   :  { %9 = vsyncpa [#allocation4], 0  ;;  %s15_s11 = sshll.u32 %s173_s0, 4  ;;  %s146_s12 = smov [#allocation2]   ;;  %s16_s11 = int_to_ptr.hbm [resolvable:$true] %s15_s11 }
   0x3   :  { %s17_s13 = sshll.u32 %s146_s12, 4  ;;  %s26_s16 = sshll.u32 %s174_s1, 4  ;;  %s18_s13 = int_to_ptr.vmem [resolvable:$true] %s17_s13  ;;  %s27_s16 = int_to_ptr.hbm [resolvable:$true] %s26_s16 }
   0x4   :  { %20 = dma.hbm_to_vmem [thread:$0]  %s16_s11, 32, %s18_s13, [#allocation3]  }
   0x5   :  { %s147_s17 = smov [#allocation5]  }
   0x6   :  { %s28_s18 = sshll.u32 %s147_s17, 4  ;;  %s29_s18 = int_to_ptr.vmem [resolvable:$true] %s28_s18 }
   0x7   :  { %31 = dma.hbm_to_vmem [thread:$0]  %s27_s16, 32, %s29_s18, [#allocation6]  }
   0x8   :  { %140 = dma.done.wait [#allocation3], 32  }
   0x9   :  { %141 = vsyncadd [#allocation3], 4294967264 }
   0xa   :  { %142 = dma.done.wait [#allocation6], 32  }
   0xb   :  { %143 = vsyncadd [#allocation6], 4294967264  ;;  %v40_v0 = vld [vmem:[#allocation2] sm:$0x3]  ;;  %v42_v1 = vld [vmem:[#allocation5] sm:$0x3] }
   0xc   :  { %s148_s0 = smov [#allocation7]   ;;  %s54_s22 = sshll.u32 %s175_s2, 4  ;;  %v41_v2 = vmul.u32 3, %v40_v0  ;;  %v43_v3 = vadd.s32 2, %v42_v1  ;;  %vm45_vm0 = vcmask 9216   ;;  %s55_s22 = int_to_ptr.hbm [resolvable:$true] %s54_s22 }
   0xd   :  { %s52_s19 = sshll.u32 %s148_s0, 4  ;;  %s53_s19 = int_to_ptr.vmem [resolvable:$true] %s52_s19 }
   0xe   :  { %v44_v4 = vadd.s32 %v43_v3, %v41_v2 }
  0x10   :  { %46 = vst.msk [vmem:[#allocation7] sm:$0x3] %vm45_vm0, %v44_v4 }
  0x11   :  { %57 = dma.vmem_to_hbm [thread:$0]  %s53_s19, 32, %s55_s22, [#allocation4]  }
  0x12   :  { %144 = dma.done.wait [#allocation4], 32  }
  0x13   :  { %145 = vsyncadd [#allocation4], 4294967264 }
  0x14   :  { %62 = vsyncpa [#allocation3], 1 }
  0x15   :  { %63 = vsyncpa [#allocation6], 1 }
  0x16   :  { %64 = vsyncpa [#allocation4], 1 }

</bundles_post_ra>
